<compile_context>
chip_gen: v7x
topology: tpu7x:2x2x1
jax: 0.10.0
libtpu: 0.0.40
codegen_flags: <defaults>
</compile_context>

<pallas_src>
import jax
import jax.numpy as jnp
from jax.experimental import pallas as pl
from jax.experimental.pallas import tpu as pltpu


_MAX_TILE_TOKENS = 512  # token-tile rows per grid step (multiple of 16 for bf16 sublane packing)


def _round_up(x, m):
    return (x + m - 1) // m * m


# ------------------------------- Pallas kernel -------------------------------

def _wordrep_kernel(wemb_ref, feat_ref, char_ref,
                    pw_ref, pb_ref, fsel_ref, cw_ref, cb_ref, o_ref):
    # Word embedding projection -> columns [0, E) of the fused output.
    acc = jnp.dot(wemb_ref[...], pw_ref[...], preferred_element_type=jnp.float32)
    acc = acc + pb_ref[...]

    # Feature embeddings -> columns [E, E+F)  (identity "selector" matmul places them).
    acc = acc + jnp.dot(feat_ref[...], fsel_ref[...], preferred_element_type=jnp.float32)

    # CharCNN -> columns [E+F, D).
    # char_ref: (L, TN, 3C) im2col windows; cw_ref: (3C, D) zero-widened conv weights.
    # Conv1d(k=3, pad=1) output at char position l == window_l @ cw ; then max-pool over l.
    # Zero-widened columns stay exactly 0 under the max, so the sum below is a clean fusion.
    cw = cw_ref[...]
    L = char_ref.shape[0]
    m = jnp.dot(char_ref[0], cw, preferred_element_type=jnp.float32)
    for l in range(1, L):  # static unroll (L is small); all math in f32 on the VPU
        m = jnp.maximum(m, jnp.dot(char_ref[l], cw, preferred_element_type=jnp.float32))
    acc = acc + m + cb_ref[...]   # bias is constant over l, so max(conv)+b == max(conv+b)

    o_ref[...] = acc.astype(o_ref.dtype)   # single full-block store of the fused row


def wordrep_pallas(wemb, feat, char_im2col, pw, pb, fsel, cw, cb, *, tile_n):
    n_pad = wemb.shape[0]
    L, kc = char_im2col.shape[0], char_im2col.shape[2]
    d = pw.shape[1]
    grid = (n_pad // tile_n,)
    return pl.pallas_call(
        _wordrep_kernel,
        out_shape=jax.ShapeDtypeStruct((n_pad, d), jnp.float32),
        grid_spec=pltpu.PrefetchScalarGridSpec(
            num_scalar_prefetch=0,
            grid=grid,
            in_specs=[
                # token-tiled activations (double-buffered by the pipeline)
                pl.BlockSpec((tile_n, wemb.shape[1]), lambda i: (i, 0)),
                pl.BlockSpec((tile_n, feat.shape[1]), lambda i: (i, 0)),
                pl.BlockSpec((L, tile_n, kc), lambda i: (0, i, 0)),
                # small weights: full blocks, constant index -> stay resident in VMEM
                pl.BlockSpec(pw.shape, lambda i: (0, 0)),
                pl.BlockSpec(pb.shape, lambda i: (0, 0)),
                pl.BlockSpec(fsel.shape, lambda i: (0, 0)),
                pl.BlockSpec(cw.shape, lambda i: (0, 0)),
                pl.BlockSpec(cb.shape, lambda i: (0, 0)),
            ],
            out_specs=pl.BlockSpec((tile_n, d), lambda i: (i, 0)),
        ),
        compiler_params=pltpu.CompilerParams(
            dimension_semantics=("parallel",),     # v7x: shard token tiles across both TCs
            vmem_limit_bytes=32 * 1024 * 1024,     # headroom vs v7x's 64 MiB physical VMEM
        ),
    )(wemb, feat, char_im2col, pw, pb, fsel, cw, cb)


# ------------------------------ parameter init -------------------------------

def init_wordrep_params(key, *, word_vocab, fr, emb_dim, feat_vocabs, feat_dims,
                        char_vocab, char_emb_dim, char_hidden_dim):
    ks = jax.random.split(key, 8)

    def rand_emb(k, vocab, dim):
        scale = jnp.sqrt(3.0 / dim)
        return jax.random.uniform(k, (vocab, dim), jnp.float32, -scale, scale)

    params = {
        # word_embedding: Embedding(word_vocab, min(emb_dim, fr)) == fr here
        "word_emb": rand_emb(ks[0], word_vocab, fr),
        # proj: Linear(fr, emb_dim), stored as (fr, emb_dim) + (1, emb_dim)
        "proj_w": jax.random.uniform(ks[1], (fr, emb_dim), jnp.float32, -0.1, 0.1),
        "proj_b": jax.random.uniform(ks[2], (1, emb_dim), jnp.float32, -0.1, 0.1),
        # feature embeddings
        "feat_embs": [rand_emb(jax.random.fold_in(ks[3], i), v, d)
                      for i, (v, d) in enumerate(zip(feat_vocabs, feat_dims))],
        # CharCNN: char embedding + Conv1d(char_emb_dim -> char_hidden_dim, k=3, pad=1)
        "char_emb": rand_emb(ks[4], char_vocab, char_emb_dim),
        "char_w": jax.random.uniform(ks[5], (3, char_emb_dim, char_hidden_dim),
                                     jnp.float32, -0.1, 0.1),
        "char_b": jax.random.uniform(ks[6], (1, char_hidden_dim), jnp.float32, -0.1, 0.1),
    }
    return params


# ------------------------------ WordRep forward -------------------------------

@jax.jit
def wordrep_forward(params, word_inputs, feature_inputs, word_seq_lengths,
                    char_inputs, char_seq_lengths, char_seq_recover):
    """
    word_inputs:      (B, S) int32
    feature_inputs:   list of (B, S) int32
    word_seq_lengths: (B,) int32        (unused by this config, kept for interface fidelity)
    char_inputs:      (B*S, L) int32
    char_seq_lengths: (B*S,) int32      (intentionally unused: CNN max-pools the full length)
    char_seq_recover: (B*S,) int32 permutation
    returns:          (B, S, emb_dim + sum(feat_dims) + char_hidden_dim) float32
    """
    B, S = word_inputs.shape
    N = B * S
    tile = min(_MAX_TILE_TOKENS, _round_up(N, 16))
    n_pad = _round_up(N, tile)
    pad_rows = n_pad - N

    # ---- XLA glue: embedding gathers (indices padded BEFORE gathering -> no float pad copies) ----
    word_idx = jnp.pad(word_inputs.reshape(N), (0, pad_rows))
    wemb = jnp.take(params["word_emb"], word_idx, axis=0).astype(jnp.bfloat16)      # (n_pad, fr)

    feats = [jnp.take(params["feat_embs"][i], jnp.pad(f.reshape(N), (0, pad_rows)), axis=0)
             for i, f in enumerate(feature_inputs)]
    feat = feats[0] if len(feats) == 1 else jnp.concatenate(feats, axis=-1)
    feat = feat.astype(jnp.bfloat16)                                                # (n_pad, F)

    # ---- chars: recover-order + conv zero-padding + im2col all folded into the int32 index gather
    C = params["char_emb"].shape[1]
    L = char_inputs.shape[1]
    pad_id = params["char_emb"].shape[0]                     # index of the appended zero row
    char_table = jnp.concatenate(
        [params["char_emb"], jnp.zeros((1, C), params["char_emb"].dtype)], axis=0)
    cidx = jnp.take(char_inputs, char_seq_recover, axis=0)                          # recovered order
    cidx = jnp.pad(cidx, ((0, pad_rows), (0, 0)), constant_values=pad_id)
    cidx = jnp.pad(cidx, ((0, 0), (1, 1)), constant_values=pad_id)                  # Conv1d pad=1
    # window for output position l covers padded char positions l, l+1, l+2
    win = jnp.stack([cidx[:, l:l + 3] for l in range(L)], axis=0)                   # (L, n_pad, 3)
    char_im2col = jnp.take(char_table, win, axis=0).reshape(L, n_pad, 3 * C)
    char_im2col = char_im2col.astype(jnp.bfloat16)                                  # (L, n_pad, 3C)

    # ---- zero-widen the (tiny) weights so each branch lands at its lane offset in the fused output
    E = params["proj_w"].shape[1]
    F = feat.shape[1]
    H = params["char_w"].shape[-1]
    D = E + F + H

    pw = jnp.pad(params["proj_w"], ((0, 0), (0, D - E))).astype(jnp.bfloat16)       # (fr, D)
    pb = jnp.pad(params["proj_b"], ((0, 0), (0, D - E)))                            # (1, D) f32
    fsel = jnp.pad(jnp.eye(F, dtype=jnp.float32),
                   ((0, 0), (E, D - E - F))).astype(jnp.bfloat16)                   # (F, D)
    cw = jnp.pad(params["char_w"].reshape(3 * C, H),
                 ((0, 0), (E + F, D - E - F - H))).astype(jnp.bfloat16)             # (3C, D)
    cb = jnp.pad(params["char_b"], ((0, 0), (E + F, D - E - F - H)))                # (1, D) f32

    out = wordrep_pallas(wemb, feat, char_im2col, pw, pb, fsel, cw, cb, tile_n=tile)
    out = out[:N].reshape(B, S, D)
    # self.drop: nn.Dropout in eval mode == identity
    return out


# ---------------------------------- driver ------------------------------------

if __name__ == "__main__":
    # Small shapes consistent with the module's forward contract.
    B, S, L = 2, 8, 12
    WORD_VOCAB, FR, EMB_DIM = 50, 32, 48          # FR < EMB_DIM => proj_word=True
    FEAT_VOCABS, FEAT_DIMS = [10], [8]
    CHAR_VOCAB, CHAR_EMB, CHAR_HID = 30, 16, 24

    root = jax.random.PRNGKey(0)
    k_params, k_w, k_f, k_c, k_perm = jax.random.split(root, 5)

    params = init_wordrep_params(
        k_params, word_vocab=WORD_VOCAB, fr=FR, emb_dim=EMB_DIM,
        feat_vocabs=FEAT_VOCABS, feat_dims=FEAT_DIMS,
        char_vocab=CHAR_VOCAB, char_emb_dim=CHAR_EMB, char_hidden_dim=CHAR_HID)

    word_inputs = jax.random.randint(k_w, (B, S), 0, WORD_VOCAB, dtype=jnp.int32)
    feature_inputs = [jax.random.randint(k_f, (B, S), 0, FEAT_VOCABS[0], dtype=jnp.int32)]
    word_seq_lengths = jnp.full((B,), S, dtype=jnp.int32)
    char_inputs = jax.random.randint(k_c, (B * S, L), 0, CHAR_VOCAB, dtype=jnp.int32)
    char_seq_lengths = jnp.full((B * S,), L, dtype=jnp.int32)
    char_seq_recover = jax.random.permutation(k_perm, B * S).astype(jnp.int32)

    out = wordrep_forward(params, word_inputs, feature_inputs, word_seq_lengths,
                          char_inputs, char_seq_lengths, char_seq_recover)
    out = jax.block_until_ready(out)

    expected = (B, S, EMB_DIM + sum(FEAT_DIMS) + CHAR_HID)
    assert out.shape == expected, (out.shape, expected)
    assert out.dtype == jnp.float32
    assert bool(jnp.all(jnp.isfinite(out)))
    print("KERNEL_OK")
</pallas_src>

<mosaic_0001>
module attributes {stable_mosaic.version = 11 : i64} {
  func.func @_wordrep_kernel(%arg0: i32, %arg1: memref<16x32xbf16, #tpu.memory_space<vmem>>, %arg2: memref<16x8xbf16, #tpu.memory_space<vmem>>, %arg3: memref<12x16x48xbf16, #tpu.memory_space<vmem>>, %arg4: memref<32x80xbf16, #tpu.memory_space<vmem>>, %arg5: memref<1x80xf32, #tpu.memory_space<vmem>>, %arg6: memref<8x80xbf16, #tpu.memory_space<vmem>>, %arg7: memref<48x80xbf16, #tpu.memory_space<vmem>>, %arg8: memref<1x80xf32, #tpu.memory_space<vmem>>, %arg9: memref<16x80xf32, #tpu.memory_space<vmem>>) attributes {dimension_semantics = [#tpu.dimension_semantics<parallel>], iteration_bounds = array<i64: 1>, scalar_prefetch = 0 : i64, scratch_operands = 0 : i64, tpu.core_type = #tpu.core_type<tc>, window_params = [{transform_indices = @transform_0, window_bounds = array<i64: 16, 32>}, {transform_indices = @transform_1, window_bounds = array<i64: 16, 8>}, {transform_indices = @transform_2, window_bounds = array<i64: 12, 16, 48>}, {pipeline_mode = #tpu.pipeline_mode<synchronous>, transform_indices = @transform_3, window_bounds = array<i64: 32, 80>}, {pipeline_mode = #tpu.pipeline_mode<synchronous>, transform_indices = @transform_4, window_bounds = array<i64: 1, 80>}, {pipeline_mode = #tpu.pipeline_mode<synchronous>, transform_indices = @transform_5, window_bounds = array<i64: 8, 80>}, {pipeline_mode = #tpu.pipeline_mode<synchronous>, transform_indices = @transform_6, window_bounds = array<i64: 48, 80>}, {pipeline_mode = #tpu.pipeline_mode<synchronous>, transform_indices = @transform_7, window_bounds = array<i64: 1, 80>}, {transform_indices = @transform_8, window_bounds = array<i64: 16, 80>}]} {
    %c0 = arith.constant 0 : index
    %c0_0 = arith.constant 0 : index
    %0 = vector.load %arg1[%c0, %c0_0] : memref<16x32xbf16, #tpu.memory_space<vmem>>, vector<16x32xbf16>
    %c0_1 = arith.constant 0 : index
    %c0_2 = arith.constant 0 : index
    %1 = vector.load %arg4[%c0_1, %c0_2] : memref<32x80xbf16, #tpu.memory_space<vmem>>, vector<32x80xbf16>
    %cst = arith.constant dense<0.000000e+00> : vector<16x80xf32>
    %2 = tpu.matmul %0, %1, %cst {dimension_numbers = #tpu.dot_dimension_numbers<[1], [0], [0], [1], [0, 0, 1, 1], [], []>} : vector<16x32xbf16>, vector<32x80xbf16>, vector<16x80xf32> -> vector<16x80xf32>
    %c0_3 = arith.constant 0 : index
    %c0_4 = arith.constant 0 : index
    %3 = vector.load %arg5[%c0_3, %c0_4] : memref<1x80xf32, #tpu.memory_space<vmem>>, vector<1x80xf32>
    %4 = vector.broadcast %3 : vector<1x80xf32> to vector<16x80xf32>
    %5 = arith.addf %2, %4 : vector<16x80xf32>
    %c0_5 = arith.constant 0 : index
    %c0_6 = arith.constant 0 : index
    %6 = vector.load %arg2[%c0_5, %c0_6] : memref<16x8xbf16, #tpu.memory_space<vmem>>, vector<16x8xbf16>
    %c0_7 = arith.constant 0 : index
    %c0_8 = arith.constant 0 : index
    %7 = vector.load %arg6[%c0_7, %c0_8] : memref<8x80xbf16, #tpu.memory_space<vmem>>, vector<8x80xbf16>
    %cst_9 = arith.constant dense<0.000000e+00> : vector<16x80xf32>
    %8 = tpu.matmul %6, %7, %cst_9 {dimension_numbers = #tpu.dot_dimension_numbers<[1], [0], [0], [1], [0, 0, 1, 1], [], []>} : vector<16x8xbf16>, vector<8x80xbf16>, vector<16x80xf32> -> vector<16x80xf32>
    %9 = arith.addf %5, %8 : vector<16x80xf32>
    %c0_10 = arith.constant 0 : index
    %c0_11 = arith.constant 0 : index
    %10 = vector.load %arg7[%c0_10, %c0_11] : memref<48x80xbf16, #tpu.memory_space<vmem>>, vector<48x80xbf16>
    %c0_12 = arith.constant 0 : index
    %c0_13 = arith.constant 0 : index
    %c0_14 = arith.constant 0 : index
    %11 = vector.load %arg3[%c0_12, %c0_13, %c0_14] : memref<12x16x48xbf16, #tpu.memory_space<vmem>>, vector<1x16x48xbf16>
    %12 = vector.shape_cast %11 : vector<1x16x48xbf16> to vector<16x48xbf16>
    %cst_15 = arith.constant dense<0.000000e+00> : vector<16x80xf32>
    %13 = tpu.matmul %12, %10, %cst_15 {dimension_numbers = #tpu.dot_dimension_numbers<[1], [0], [0], [1], [0, 0, 1, 1], [], []>} : vector<16x48xbf16>, vector<48x80xbf16>, vector<16x80xf32> -> vector<16x80xf32>
    %c1 = arith.constant 1 : index
    %c0_16 = arith.constant 0 : index
    %c0_17 = arith.constant 0 : index
    %14 = vector.load %arg3[%c1, %c0_16, %c0_17] : memref<12x16x48xbf16, #tpu.memory_space<vmem>>, vector<1x16x48xbf16>
    %15 = vector.shape_cast %14 : vector<1x16x48xbf16> to vector<16x48xbf16>
    %cst_18 = arith.constant dense<0.000000e+00> : vector<16x80xf32>
    %16 = tpu.matmul %15, %10, %cst_18 {dimension_numbers = #tpu.dot_dimension_numbers<[1], [0], [0], [1], [0, 0, 1, 1], [], []>} : vector<16x48xbf16>, vector<48x80xbf16>, vector<16x80xf32> -> vector<16x80xf32>
    %17 = arith.maximumf %13, %16 : vector<16x80xf32>
    %c2 = arith.constant 2 : index
    %c0_19 = arith.constant 0 : index
    %c0_20 = arith.constant 0 : index
    %18 = vector.load %arg3[%c2, %c0_19, %c0_20] : memref<12x16x48xbf16, #tpu.memory_space<vmem>>, vector<1x16x48xbf16>
    %19 = vector.shape_cast %18 : vector<1x16x48xbf16> to vector<16x48xbf16>
    %cst_21 = arith.constant dense<0.000000e+00> : vector<16x80xf32>
    %20 = tpu.matmul %19, %10, %cst_21 {dimension_numbers = #tpu.dot_dimension_numbers<[1], [0], [0], [1], [0, 0, 1, 1], [], []>} : vector<16x48xbf16>, vector<48x80xbf16>, vector<16x80xf32> -> vector<16x80xf32>
    %21 = arith.maximumf %17, %20 : vector<16x80xf32>
    %c3 = arith.constant 3 : index
    %c0_22 = arith.constant 0 : index
    %c0_23 = arith.constant 0 : index
    %22 = vector.load %arg3[%c3, %c0_22, %c0_23] : memref<12x16x48xbf16, #tpu.memory_space<vmem>>, vector<1x16x48xbf16>
    %23 = vector.shape_cast %22 : vector<1x16x48xbf16> to vector<16x48xbf16>
    %cst_24 = arith.constant dense<0.000000e+00> : vector<16x80xf32>
    %24 = tpu.matmul %23, %10, %cst_24 {dimension_numbers = #tpu.dot_dimension_numbers<[1], [0], [0], [1], [0, 0, 1, 1], [], []>} : vector<16x48xbf16>, vector<48x80xbf16>, vector<16x80xf32> -> vector<16x80xf32>
    %25 = arith.maximumf %21, %24 : vector<16x80xf32>
    %c4 = arith.constant 4 : index
    %c0_25 = arith.constant 0 : index
    %c0_26 = arith.constant 0 : index
    %26 = vector.load %arg3[%c4, %c0_25, %c0_26] : memref<12x16x48xbf16, #tpu.memory_space<vmem>>, vector<1x16x48xbf16>
    %27 = vector.shape_cast %26 : vector<1x16x48xbf16> to vector<16x48xbf16>
    %cst_27 = arith.constant dense<0.000000e+00> : vector<16x80xf32>
    %28 = tpu.matmul %27, %10, %cst_27 {dimension_numbers = #tpu.dot_dimension_numbers<[1], [0], [0], [1], [0, 0, 1, 1], [], []>} : vector<16x48xbf16>, vector<48x80xbf16>, vector<16x80xf32> -> vector<16x80xf32>
    %29 = arith.maximumf %25, %28 : vector<16x80xf32>
    %c5 = arith.constant 5 : index
    %c0_28 = arith.constant 0 : index
    %c0_29 = arith.constant 0 : index
    %30 = vector.load %arg3[%c5, %c0_28, %c0_29] : memref<12x16x48xbf16, #tpu.memory_space<vmem>>, vector<1x16x48xbf16>
    %31 = vector.shape_cast %30 : vector<1x16x48xbf16> to vector<16x48xbf16>
    %cst_30 = arith.constant dense<0.000000e+00> : vector<16x80xf32>
    %32 = tpu.matmul %31, %10, %cst_30 {dimension_numbers = #tpu.dot_dimension_numbers<[1], [0], [0], [1], [0, 0, 1, 1], [], []>} : vector<16x48xbf16>, vector<48x80xbf16>, vector<16x80xf32> -> vector<16x80xf32>
    %33 = arith.maximumf %29, %32 : vector<16x80xf32>
    %c6 = arith.constant 6 : index
    %c0_31 = arith.constant 0 : index
    %c0_32 = arith.constant 0 : index
    %34 = vector.load %arg3[%c6, %c0_31, %c0_32] : memref<12x16x48xbf16, #tpu.memory_space<vmem>>, vector<1x16x48xbf16>
    %35 = vector.shape_cast %34 : vector<1x16x48xbf16> to vector<16x48xbf16>
    %cst_33 = arith.constant dense<0.000000e+00> : vector<16x80xf32>
    %36 = tpu.matmul %35, %10, %cst_33 {dimension_numbers = #tpu.dot_dimension_numbers<[1], [0], [0], [1], [0, 0, 1, 1], [], []>} : vector<16x48xbf16>, vector<48x80xbf16>, vector<16x80xf32> -> vector<16x80xf32>
    %37 = arith.maximumf %33, %36 : vector<16x80xf32>
    %c7 = arith.constant 7 : index
    %c0_34 = arith.constant 0 : index
    %c0_35 = arith.constant 0 : index
    %38 = vector.load %arg3[%c7, %c0_34, %c0_35] : memref<12x16x48xbf16, #tpu.memory_space<vmem>>, vector<1x16x48xbf16>
    %39 = vector.shape_cast %38 : vector<1x16x48xbf16> to vector<16x48xbf16>
    %cst_36 = arith.constant dense<0.000000e+00> : vector<16x80xf32>
    %40 = tpu.matmul %39, %10, %cst_36 {dimension_numbers = #tpu.dot_dimension_numbers<[1], [0], [0], [1], [0, 0, 1, 1], [], []>} : vector<16x48xbf16>, vector<48x80xbf16>, vector<16x80xf32> -> vector<16x80xf32>
    %41 = arith.maximumf %37, %40 : vector<16x80xf32>
    %c8 = arith.constant 8 : index
    %c0_37 = arith.constant 0 : index
    %c0_38 = arith.constant 0 : index
    %42 = vector.load %arg3[%c8, %c0_37, %c0_38] : memref<12x16x48xbf16, #tpu.memory_space<vmem>>, vector<1x16x48xbf16>
    %43 = vector.shape_cast %42 : vector<1x16x48xbf16> to vector<16x48xbf16>
    %cst_39 = arith.constant dense<0.000000e+00> : vector<16x80xf32>
    %44 = tpu.matmul %43, %10, %cst_39 {dimension_numbers = #tpu.dot_dimension_numbers<[1], [0], [0], [1], [0, 0, 1, 1], [], []>} : vector<16x48xbf16>, vector<48x80xbf16>, vector<16x80xf32> -> vector<16x80xf32>
    %45 = arith.maximumf %41, %44 : vector<16x80xf32>
    %c9 = arith.constant 9 : index
    %c0_40 = arith.constant 0 : index
    %c0_41 = arith.constant 0 : index
    %46 = vector.load %arg3[%c9, %c0_40, %c0_41] : memref<12x16x48xbf16, #tpu.memory_space<vmem>>, vector<1x16x48xbf16>
    %47 = vector.shape_cast %46 : vector<1x16x48xbf16> to vector<16x48xbf16>
    %cst_42 = arith.constant dense<0.000000e+00> : vector<16x80xf32>
    %48 = tpu.matmul %47, %10, %cst_42 {dimension_numbers = #tpu.dot_dimension_numbers<[1], [0], [0], [1], [0, 0, 1, 1], [], []>} : vector<16x48xbf16>, vector<48x80xbf16>, vector<16x80xf32> -> vector<16x80xf32>
    %49 = arith.maximumf %45, %48 : vector<16x80xf32>
    %c10 = arith.constant 10 : index
    %c0_43 = arith.constant 0 : index
    %c0_44 = arith.constant 0 : index
    %50 = vector.load %arg3[%c10, %c0_43, %c0_44] : memref<12x16x48xbf16, #tpu.memory_space<vmem>>, vector<1x16x48xbf16>
    %51 = vector.shape_cast %50 : vector<1x16x48xbf16> to vector<16x48xbf16>
    %cst_45 = arith.constant dense<0.000000e+00> : vector<16x80xf32>
    %52 = tpu.matmul %51, %10, %cst_45 {dimension_numbers = #tpu.dot_dimension_numbers<[1], [0], [0], [1], [0, 0, 1, 1], [], []>} : vector<16x48xbf16>, vector<48x80xbf16>, vector<16x80xf32> -> vector<16x80xf32>
    %53 = arith.maximumf %49, %52 : vector<16x80xf32>
    %c11 = arith.constant 11 : index
    %c0_46 = arith.constant 0 : index
    %c0_47 = arith.constant 0 : index
    %54 = vector.load %arg3[%c11, %c0_46, %c0_47] : memref<12x16x48xbf16, #tpu.memory_space<vmem>>, vector<1x16x48xbf16>
    %55 = vector.shape_cast %54 : vector<1x16x48xbf16> to vector<16x48xbf16>
    %cst_48 = arith.constant dense<0.000000e+00> : vector<16x80xf32>
    %56 = tpu.matmul %55, %10, %cst_48 {dimension_numbers = #tpu.dot_dimension_numbers<[1], [0], [0], [1], [0, 0, 1, 1], [], []>} : vector<16x48xbf16>, vector<48x80xbf16>, vector<16x80xf32> -> vector<16x80xf32>
    %57 = arith.maximumf %53, %56 : vector<16x80xf32>
    %58 = arith.addf %9, %57 : vector<16x80xf32>
    %c0_49 = arith.constant 0 : index
    %c0_50 = arith.constant 0 : index
    %59 = vector.load %arg8[%c0_49, %c0_50] : memref<1x80xf32, #tpu.memory_space<vmem>>, vector<1x80xf32>
    %60 = vector.broadcast %59 : vector<1x80xf32> to vector<16x80xf32>
    %61 = arith.addf %58, %60 : vector<16x80xf32>
    %c0_51 = arith.constant 0 : index
    %c0_52 = arith.constant 0 : index
    %62 = vector.load %arg9[%c0_51, %c0_52] : memref<16x80xf32, #tpu.memory_space<vmem>>, vector<16x80xf32>
    tpu.vector_store %arg9[%c0_51, %c0_52], %61 {strides = array<i32>} : memref<16x80xf32, #tpu.memory_space<vmem>>, vector<16x80xf32>,
    return
  }
  func.func @transform_0(%arg0: i32) -> (i32, i32) {
    %c0_i32 = arith.constant 0 : i32
    %c0_i32_0 = arith.constant 0 : i32
    return %arg0, %c0_i32 : i32, i32
  }
  func.func @transform_1(%arg0: i32) -> (i32, i32) {
    %c0_i32 = arith.constant 0 : i32
    %c0_i32_0 = arith.constant 0 : i32
    return %arg0, %c0_i32 : i32, i32
  }
  func.func @transform_2(%arg0: i32) -> (i32, i32, i32) {
    %c0_i32 = arith.constant 0 : i32
    %c0_i32_0 = arith.constant 0 : i32
    %c0_i32_1 = arith.constant 0 : i32
    return %c0_i32, %arg0, %c0_i32_0 : i32, i32, i32
  }
  func.func @transform_3(%arg0: i32) -> (i32, i32) {
    %c0_i32 = arith.constant 0 : i32
    %c0_i32_0 = arith.constant 0 : i32
    %c0_i32_1 = arith.constant 0 : i32
    return %c0_i32, %c0_i32_0 : i32, i32
  }
  func.func @transform_4(%arg0: i32) -> (i32, i32) {
    %c0_i32 = arith.constant 0 : i32
    %c0_i32_0 = arith.constant 0 : i32
    %c0_i32_1 = arith.constant 0 : i32
    return %c0_i32, %c0_i32_0 : i32, i32
  }
  func.func @transform_5(%arg0: i32) -> (i32, i32) {
    %c0_i32 = arith.constant 0 : i32
    %c0_i32_0 = arith.constant 0 : i32
    %c0_i32_1 = arith.constant 0 : i32
    return %c0_i32, %c0_i32_0 : i32, i32
  }
  func.func @transform_6(%arg0: i32) -> (i32, i32) {
    %c0_i32 = arith.constant 0 : i32
    %c0_i32_0 = arith.constant 0 : i32
    %c0_i32_1 = arith.constant 0 : i32
    return %c0_i32, %c0_i32_0 : i32, i32
  }
  func.func @transform_7(%arg0: i32) -> (i32, i32) {
    %c0_i32 = arith.constant 0 : i32
    %c0_i32_0 = arith.constant 0 : i32
    %c0_i32_1 = arith.constant 0 : i32
    return %c0_i32, %c0_i32_0 : i32, i32
  }
  func.func @transform_8(%arg0: i32) -> (i32, i32) {
    %c0_i32 = arith.constant 0 : i32
    %c0_i32_0 = arith.constant 0 : i32
    return %arg0, %c0_i32 : i32, i32
  }
}

</mosaic_0001>

<bundles_post_ra>
// kernel: wordrep_forward.1
= control target key start
LH: loop header
LB: loop body
LE: loop exit
PB: predicated region body
PF: predicated region fallthrough
CT: control target
= control target key end

     0   :  { %vm118_vm0 = vcmask 1043456   ;;  %v1157_v1 = vmov 0.0   ;;  %vm1158_vm1 = vmmov 0   ;;  %vm114_vm2 = vcmask 64512   ;;  %s1412_s0 = inlined_call_operand.vmem [shape: bf16[16,32], index: 0, kind: input, shape index: {}]   ;;  %s1413_s1 = inlined_call_operand.vmem [shape: bf16[16,8], index: 1, kind: input, shape index: {}]   ;;  %s1414_s2 = inlined_call_operand.vmem [shape: bf16[12,16,48], index: 2, kind: input, shape index: {}]   ;;  %s1415_s3 = inlined_call_operand.vmem [shape: bf16[32,80], index: 3, kind: input, shape index: {}]   ;;  %s1416_s4 = inlined_call_operand.vmem [shape: f32[1,80], index: 4, kind: input, shape index: {}]   ;;  %s1417_s5 = inlined_call_operand.vmem [shape: bf16[8,80], index: 5, kind: input, shape index: {}]   ;;  %s1418_s6 = inlined_call_operand.vmem [shape: bf16[48,80], index: 6, kind: input, shape index: {}]   ;;  %s1419_s7 = inlined_call_operand.vmem [shape: f32[1,80], index: 7, kind: input, shape index: {}]   ;;  %s1420_s8 = inlined_call_operand.hbm [shape: f32[16,80], index: 8, kind: output, shape index: {}]  }
   0x1   :  { %v108_v0 = vld [vmem:[%s1417_s5] sm:$0xf]  ;;  %983 = vmatprep.subr.bf16.mxu1 %v1157_v1  ;;  %975 = vmatprep.subr.bf16.mxu0 %v1157_v1  ;;  %v1117_v6 = vld [vmem:[%s1415_s3 + $0x8] sm:$0xff]   ;;  %vm61_vm3 = vcmask 261120   ;;  %v1249_v9 = vld [vmem:[%s1418_s6 + $0x10] sm:$0xff]   ;;  %vm196_vm4 = vcmask 392192  }
   0x2   :  { %v120_v2 = vsel %vm118_vm0, %v108_v0, 0  ;;  %v1114_v3 = vld [vmem:[%s1415_s3] sm:$0xff]   ;;  %985 = vmatprep.mubr.msk.bf16.mxu1 %vm1158_vm1, %v1157_v1  ;;  %979 = vmatprep.mubr.msk.bf16.mxu0 %vm1158_vm1, %v1157_v1  ;;  %v1239_v8 = vld [vmem:[%s1418_s6 + $0x8] sm:$0xff]  }
   0x3   :  { %v1115_v4 = vld [vmem:[%s1413_s1] sm:$0xff]   ;;  %984 = vmatpush3.bf16.msra.mxu1 %v120_v2  ;;  %976 = vmatpush3.bf16.msra.mxu0 %v1114_v3  ;;  %v1122_v11 = vld [vmem:[%s1414_s2 + $0x8] sm:$0xff]  }
   0x4   :  { %v1223_v5 = vld [vmem:[%s1418_s6] sm:$0xff]   ;;  %989 = vmatprep.subr.bf16.mxu1 %v1157_v1  ;;  %977 = vmatprep.subr.bf16.mxu0 %v1157_v1 }
   0x5   :  { %v1118_v7 = vld [vmem:[%s1412_s0] sm:$0xff]  }
   0x6   :  { %986 = vmatmul.mubr.msk.bf16.vlgmr.msra.gmra.mrb[0].mxu1 %vm114_vm2, %v1115_v4  ;;  %v1121_v10 = vld [vmem:[%s1414_s2] sm:$0xff]  }
   0x7   :  { %990 = vmatpush3.bf16.msra.mxu1 %v1223_v5  ;;  %995 = vmatprep.mubr.msk.bf16.mxu1 %vm1158_vm1, %v1157_v1 }
   0x8   :  { %978 = vmatpush3.bf16.msra.mxu0 %v1117_v6  ;;  %991 = vmatprep.subr.bf16.mxu1 %v1157_v1 }
   0x9   :  { %999 = vmatprep.subr.bf16.mxu0 %v1157_v1 }
   0xb   :  { %980 = vmatmul.mubr.msk.bf16.vlgmr.msra.gmra.mrb[0].mxu0 %vm61_vm3, %v1118_v7  ;;  %992 = vmatpush3.bf16.msra.mxu1 %v1239_v8 }
   0xc   :  { %1000 = vmatpush3.bf16.msra.mxu0 %v1223_v5  ;;  %993 = vmatprep.subr.bf16.mxu1 %v1157_v1 }
   0xd   :  { %1001 = vmatprep.subr.bf16.mxu0 %v1157_v1  ;;  %1005 = vmatprep.mubr.msk.bf16.mxu0 %vm1158_vm1, %v1157_v1 }
   0xf   :  { %994 = vmatpush3.bf16.msra.mxu1 %v1249_v9 }
  0x10   :  { %1002 = vmatpush3.bf16.msra.mxu0 %v1239_v8  ;;  %1009 = vmatprep.subr.bf16.mxu1 %v1157_v1 }
  0x11   :  { %1003 = vmatprep.subr.bf16.mxu0 %v1157_v1 }
  0x12   :  { %996 = vmatmul.mubr.msk.bf16.vlgmr.msra.gmra.mrb[4].mxu1 %vm196_vm4, %v1121_v10 }
  0x13   :  { %1010 = vmatpush3.bf16.msra.mxu1 %v1223_v5  ;;  %1015 = vmatprep.mubr.msk.bf16.mxu1 %vm1158_vm1, %v1157_v1 }
  0x14   :  { %1004 = vmatpush3.bf16.msra.mxu0 %v1249_v9  ;;  %1011 = vmatprep.subr.bf16.mxu1 %v1157_v1 }
  0x15   :  { %13 = vsyncpa [#allocation3], 0  ;;  %1019 = vmatprep.subr.bf16.mxu0 %v1157_v1  ;;  %v1123_v12 = vld [vmem:[%s1414_s2 + $0x10] sm:$0xff]   ;;  %v1124_v13 = vld [vmem:[%s1414_s2 + $0x18] sm:$0xff]   ;;  %s1159_s3 = smov [#allocation2]   ;;  %vm846_vm5 = vcmask 654336  }
  0x16   :  { %v1125_v14 = vld [vmem:[%s1414_s2 + $0x20] sm:$0xff]   ;;  %v1126_v15 = vld [vmem:[%s1414_s2 + $0x28] sm:$0xff]   ;;  %v1127_v16 = vld [vmem:[%s1414_s2 + $0x30] sm:$0xff]   ;;  %s854_s17 = sshll.u32 %s1159_s3, 4  ;;  %s855_s17 = int_to_ptr.vmem [resolvable:$true] %s854_s17 }
  0x17   :  { %1006 = vmatmul.mubr.msk.bf16.vlgmr.msra.gmra.mrb[4].mxu0 %vm196_vm4, %v1122_v11  ;;  %1012 = vmatpush3.bf16.msra.mxu1 %v1239_v8  ;;  %v1128_v17 = vld [vmem:[%s1414_s2 + $0x38] sm:$0xff]   ;;  %v1129_v18 = vld [vmem:[%s1414_s2 + $0x40] sm:$0xff]   ;;  %v1130_v19 = vld [vmem:[%s1414_s2 + $0x48] sm:$0xff]   ;;  %s1133_s18 = scalar_lea.vmem %s855_s17, 256  ;;  %p1138_p1 = scmp.lt.s32.totalorder %s855_s17, %s855_s17 }
  0x18   :  { %1020 = vmatpush3.bf16.msra.mxu0 %v1223_v5  ;;  %1013 = vmatprep.subr.bf16.mxu1 %v1157_v1  ;;  %v1131_v20 = vld [vmem:[%s1414_s2 + $0x50] sm:$0xff]   ;;  %v1132_v21 = vld [vmem:[%s1414_s2 + $0x58] sm:$0xff]   ;;  %v865_v26 = vld [vmem:[%s1416_s4] ss:$0 sm:$0xff]  ;;  %p1134_p0 = scmp.ne.s32.totalorder %s855_s17, %s1133_s18  ;;  %p1139_p2 = scmp.lt.s32.totalorder %s1133_s18, %s1133_s18 }
  0x19   :  { %1021 = vmatprep.subr.bf16.mxu0 %v1157_v1  ;;  %1025 = vmatprep.mubr.msk.bf16.mxu0 %vm1158_vm1, %v1157_v1 }
  0x1a   :  { %p1140_p3 = por %p1139_p2, %p1138_p1 }
  0x1b   :  { %1014 = vmatpush3.bf16.msra.mxu1 %v1249_v9 }
  0x1c   :  { %1022 = vmatpush3.bf16.msra.mxu0 %v1239_v8  ;;  %1029 = vmatprep.subr.bf16.mxu1 %v1157_v1  ;;  %p1141_p4 = pnand %p1140_p3, %p1134_p0 }
  0x1d   :  { %1023 = vmatprep.subr.bf16.mxu0 %v1157_v1 }
  0x1e   :  { %1016 = vmatmul.mubr.msk.bf16.vlgmr.msra.gmra.mrb[8].mxu1 %vm196_vm4, %v1123_v12 }
  0x1f   :  { %1030 = vmatpush3.bf16.msra.mxu1 %v1223_v5  ;;  %1035 = vmatprep.mubr.msk.bf16.mxu1 %vm1158_vm1, %v1157_v1 }
  0x20   :  { %1024 = vmatpush3.bf16.msra.mxu0 %v1249_v9  ;;  %1031 = vmatprep.subr.bf16.mxu1 %v1157_v1 }
  0x21   :  { %1039 = vmatprep.subr.bf16.mxu0 %v1157_v1 }
  0x23   :  { %1026 = vmatmul.mubr.msk.bf16.vlgmr.msra.gmra.mrb[8].mxu0 %vm196_vm4, %v1124_v13  ;;  %1032 = vmatpush3.bf16.msra.mxu1 %v1239_v8 }
  0x24   :  { %1040 = vmatpush3.bf16.msra.mxu0 %v1223_v5  ;;  %1033 = vmatprep.subr.bf16.mxu1 %v1157_v1 }
  0x25   :  { %1041 = vmatprep.subr.bf16.mxu0 %v1157_v1  ;;  %1045 = vmatprep.mubr.msk.bf16.mxu0 %vm1158_vm1, %v1157_v1 }
  0x27   :  { %1034 = vmatpush3.bf16.msra.mxu1 %v1249_v9 }
  0x28   :  { %1042 = vmatpush3.bf16.msra.mxu0 %v1239_v8  ;;  %1049 = vmatprep.subr.bf16.mxu1 %v1157_v1 }
  0x29   :  { %1043 = vmatprep.subr.bf16.mxu0 %v1157_v1 }
  0x2a   :  { %1036 = vmatmul.mubr.msk.bf16.vlgmr.msra.gmra.mrb[12].mxu1 %vm196_vm4, %v1125_v14 }
  0x2b   :  { %1050 = vmatpush3.bf16.msra.mxu1 %v1223_v5  ;;  %1055 = vmatprep.mubr.msk.bf16.mxu1 %vm1158_vm1, %v1157_v1 }
  0x2c   :  { %1044 = vmatpush3.bf16.msra.mxu0 %v1249_v9  ;;  %1051 = vmatprep.subr.bf16.mxu1 %v1157_v1 }
  0x2d   :  { %1059 = vmatprep.subr.bf16.mxu0 %v1157_v1 }
  0x2f   :  { %1046 = vmatmul.mubr.msk.bf16.vlgmr.msra.gmra.mrb[12].mxu0 %vm196_vm4, %v1126_v15  ;;  %1052 = vmatpush3.bf16.msra.mxu1 %v1239_v8 }
  0x30   :  { %1060 = vmatpush3.bf16.msra.mxu0 %v1223_v5  ;;  %1053 = vmatprep.subr.bf16.mxu1 %v1157_v1 }
  0x31   :  { %1061 = vmatprep.subr.bf16.mxu0 %v1157_v1  ;;  %1065 = vmatprep.mubr.msk.bf16.mxu0 %vm1158_vm1, %v1157_v1 }
  0x33   :  { %1054 = vmatpush3.bf16.msra.mxu1 %v1249_v9 }
  0x34   :  { %1062 = vmatpush3.bf16.msra.mxu0 %v1239_v8  ;;  %1069 = vmatprep.subr.bf16.mxu1 %v1157_v1 }
  0x35   :  { %1063 = vmatprep.subr.bf16.mxu0 %v1157_v1 }
  0x36   :  { %1056 = vmatmul.mubr.msk.bf16.vlgmr.msra.gmra.mrb[16].mxu1 %vm196_vm4, %v1127_v16 }
  0x37   :  { %1070 = vmatpush3.bf16.msra.mxu1 %v1223_v5  ;;  %1075 = vmatprep.mubr.msk.bf16.mxu1 %vm1158_vm1, %v1157_v1 }
  0x38   :  { %1064 = vmatpush3.bf16.msra.mxu0 %v1249_v9  ;;  %1071 = vmatprep.subr.bf16.mxu1 %v1157_v1 }
  0x39   :  { %1079 = vmatprep.subr.bf16.mxu0 %v1157_v1 }
  0x3b   :  { %1066 = vmatmul.mubr.msk.bf16.vlgmr.msra.gmra.mrb[16].mxu0 %vm196_vm4, %v1128_v17  ;;  %1072 = vmatpush3.bf16.msra.mxu1 %v1239_v8 }
  0x3c   :  { %1080 = vmatpush3.bf16.msra.mxu0 %v1223_v5  ;;  %1073 = vmatprep.subr.bf16.mxu1 %v1157_v1 }
  0x3d   :  { %1081 = vmatprep.subr.bf16.mxu0 %v1157_v1  ;;  %1085 = vmatprep.mubr.msk.bf16.mxu0 %vm1158_vm1, %v1157_v1 }
  0x3f   :  { %1074 = vmatpush3.bf16.msra.mxu1 %v1249_v9 }
  0x40   :  { %1082 = vmatpush3.bf16.msra.mxu0 %v1239_v8  ;;  %1089 = vmatprep.subr.bf16.mxu1 %v1157_v1 }
  0x41   :  { %1083 = vmatprep.subr.bf16.mxu0 %v1157_v1 }
  0x42   :  { %1076 = vmatmul.mubr.msk.bf16.vlgmr.msra.gmra.mrb[20].mxu1 %vm196_vm4, %v1129_v18 }
  0x43   :  { %1090 = vmatpush3.bf16.msra.mxu1 %v1223_v5  ;;  %1095 = vmatprep.mubr.msk.bf16.mxu1 %vm1158_vm1, %v1157_v1 }
  0x44   :  { %1084 = vmatpush3.bf16.msra.mxu0 %v1249_v9  ;;  %1091 = vmatprep.subr.bf16.mxu1 %v1157_v1 }
  0x45   :  { %1099 = vmatprep.subr.bf16.mxu0 %v1157_v1 }
  0x47   :  { %1086 = vmatmul.mubr.msk.bf16.vlgmr.msra.gmra.mrb[20].mxu0 %vm196_vm4, %v1130_v19  ;;  %1092 = vmatpush3.bf16.msra.mxu1 %v1239_v8 }
  0x48   :  { %1100 = vmatpush3.bf16.msra.mxu0 %v1223_v5  ;;  %1093 = vmatprep.subr.bf16.mxu1 %v1157_v1 }
  0x49   :  { %1101 = vmatprep.subr.bf16.mxu0 %v1157_v1  ;;  %1105 = vmatprep.mubr.msk.bf16.mxu0 %vm1158_vm1, %v1157_v1 }
  0x4b   :  { %1094 = vmatpush3.bf16.msra.mxu1 %v1249_v9 }
  0x4c   :  { %1102 = vmatpush3.bf16.msra.mxu0 %v1239_v8 }
  0x4d   :  { %1103 = vmatprep.subr.bf16.mxu0 %v1157_v1 }
  0x4e   :  { %1096 = vmatmul.mubr.msk.bf16.vlgmr.msra.gmra.mrb[24].mxu1 %vm196_vm4, %v1131_v20 }
  0x50   :  { %1104 = vmatpush3.bf16.msra.mxu0 %v1249_v9 }
  0x53   :  { %1106 = vmatmul.mubr.msk.bf16.vlgmr.msra.gmra.mrb[24].mxu0 %vm196_vm4, %v1132_v21 }
  0xd9   :  { %v156_v22 = vpop.f32.mrb[0].mxu1 }
  0xda   :  { %v987_v23 = vpop.f32.mrb[1].mxu1 }
  0xdb   :  { %v159_v24 = vpop.f32.mrb[2].mxu1 }
  0xdc   :  { %v988_v25 = vpop.f32.mrb[3].mxu1 }
  0xde   :  { %v99_v27 = vpop.f32.mrb[0].mxu0 }
  0xdf   :  { %v100_v28 = vadd.f32 %v865_v26, %v99_v27  ;;  %v981_v29 = vpop.f32.mrb[1].mxu0 }
  0xe0   :  { %v102_v30 = vpop.f32.mrb[2].mxu0 }
  0xe1   :  { %v1391_v31 = vadd.f32 %v156_v22, %v100_v28  ;;  %v103_v32 = vadd.f32 %v865_v26, %v102_v30  ;;  %v982_v33 = vpop.f32.mrb[3].mxu0 }
  0xe3   :  { %v1393_v34 = vadd.f32 %v159_v24, %v103_v32 }
  0xe5   :  { %v234_v35 = vpop.f32.mrb[4].mxu1 }
  0xe6   :  { %v997_v36 = vpop.f32.mrb[5].mxu1 }
  0xe7   :  { %v237_v37 = vpop.f32.mrb[6].mxu1 }
  0xe8   :  { %v998_v38 = vpop.f32.mrb[7].mxu1 }
  0xea   :  { %v286_v39 = vpop.f32.mrb[4].mxu0 }
  0xeb   :  { %v293_v40 = vmax.f32 %v234_v35, %v286_v39  ;;  %v1007_v41 = vpop.f32.mrb[5].mxu0 }
  0xec   :  { %v289_v42 = vpop.f32.mrb[6].mxu0 }
  0xed   :  { %v294_v43 = vmax.f32 %v237_v37, %v289_v42  ;;  %v1008_v44 = vpop.f32.mrb[7].mxu0 }
  0xf1   :  { %v340_v45 = vpop.f32.mrb[8].mxu1 }
  0xf2   :  { %v347_v46 = vmax.f32 %v293_v40, %v340_v45  ;;  %v1017_v47 = vpop.f32.mrb[9].mxu1  ;;  %v921_v40 = vld [vmem:[%s1419_s7] ss:$0 sm:$0xff] }
  0xf3   :  { %v343_v48 = vpop.f32.mrb[10].mxu1 }
  0xf4   :  { %v348_v49 = vmax.f32 %v294_v43, %v343_v48  ;;  %v1018_v50 = vpop.f32.mrb[11].mxu1 }
  0xf6   :  { %v394_v51 = vpop.f32.mrb[8].mxu0 }
  0xf7   :  { %v401_v52 = vmax.f32 %v347_v46, %v394_v51  ;;  %v1027_v53 = vpop.f32.mrb[9].mxu0 }
  0xf8   :  { %v397_v54 = vpop.f32.mrb[10].mxu0 }
  0xf9   :  { %v402_v55 = vmax.f32 %v348_v49, %v397_v54  ;;  %v1028_v56 = vpop.f32.mrb[11].mxu0 }
  0xfd   :  { %v448_v57 = vpop.f32.mrb[12].mxu1 }
  0xfe   :  { %v455_v58 = vmax.f32 %v401_v52, %v448_v57  ;;  %v1037_v59 = vpop.f32.mrb[13].mxu1 }
  0xff   :  { %v451_v60 = vpop.f32.mrb[14].mxu1 }
 0x100   :  { %v456_v61 = vmax.f32 %v402_v55, %v451_v60  ;;  %v1038_v62 = vpop.f32.mrb[15].mxu1 }
 0x102   :  { %v502_v63 = vpop.f32.mrb[12].mxu0 }
 0x103   :  { %v509_v0 = vmax.f32 %v455_v58, %v502_v63  ;;  %v1047_v1 = vpop.f32.mrb[13].mxu0 }
 0x104   :  { %v505_v2 = vpop.f32.mrb[14].mxu0 }
 0x105   :  { %v510_v3 = vmax.f32 %v456_v61, %v505_v2  ;;  %v1048_v4 = vpop.f32.mrb[15].mxu0 }
 0x109   :  { %v556_v5 = vpop.f32.mrb[16].mxu1 }
 0x10a   :  { %v563_v6 = vmax.f32 %v509_v0, %v556_v5  ;;  %v1057_v7 = vpop.f32.mrb[17].mxu1 }
 0x10b   :  { %v559_v8 = vpop.f32.mrb[18].mxu1 }
 0x10c   :  { %v564_v9 = vmax.f32 %v510_v3, %v559_v8  ;;  %v1058_v10 = vpop.f32.mrb[19].mxu1 }
 0x10e   :  { %v610_v11 = vpop.f32.mrb[16].mxu0 }
 0x10f   :  { %v617_v12 = vmax.f32 %v563_v6, %v610_v11  ;;  %v1067_v13 = vpop.f32.mrb[17].mxu0 }
 0x110   :  { %v613_v14 = vpop.f32.mrb[18].mxu0 }
 0x111   :  { %v618_v15 = vmax.f32 %v564_v9, %v613_v14  ;;  %v1068_v16 = vpop.f32.mrb[19].mxu0 }
 0x115   :  { %v664_v17 = vpop.f32.mrb[20].mxu1 }
 0x116   :  { %v671_v18 = vmax.f32 %v617_v12, %v664_v17  ;;  %v1077_v19 = vpop.f32.mrb[21].mxu1 }
 0x117   :  { %v667_v20 = vpop.f32.mrb[22].mxu1 }
 0x118   :  { %v672_v21 = vmax.f32 %v618_v15, %v667_v20  ;;  %v1078_v22 = vpop.f32.mrb[23].mxu1 }
 0x11a   :  { %v718_v23 = vpop.f32.mrb[20].mxu0 }
 0x11b   :  { %v725_v24 = vmax.f32 %v671_v18, %v718_v23  ;;  %v1087_v25 = vpop.f32.mrb[21].mxu0 }
 0x11c   :  { %v721_v26 = vpop.f32.mrb[22].mxu0 }
 0x11d   :  { %v726_v27 = vmax.f32 %v672_v21, %v721_v26  ;;  %v1088_v28 = vpop.f32.mrb[23].mxu0 }
 0x121   :  { %v772_v29 = vpop.f32.mrb[24].mxu1 }
 0x122   :  { %v779_v30 = vmax.f32 %v725_v24, %v772_v29  ;;  %v1097_v32 = vpop.f32.mrb[25].mxu1 }
 0x123   :  { %v775_v33 = vpop.f32.mrb[26].mxu1 }
 0x124   :  { %v780_v35 = vmax.f32 %v726_v27, %v775_v33  ;;  %v1098_v36 = vpop.f32.mrb[27].mxu1 }
 0x126   :  { %v826_v37 = vpop.f32.mrb[24].mxu0 }
 0x127   :  { %v833_v38 = vmax.f32 %v779_v30, %v826_v37  ;;  %v1107_v39 = vpop.f32.mrb[25].mxu0 }
 0x128   :  { %v829_v41 = vpop.f32.mrb[26].mxu0 }
 0x129   :  { %v835_v42 = vadd.f32 %v833_v38, %v1391_v31  ;;  %v834_v43 = vmax.f32 %v780_v35, %v829_v41  ;;  %v1108_v44 = vpop.f32.mrb[27].mxu0 }
 0x12b   :  { %v844_v45 = vadd.f32 %v921_v40, %v835_v42  ;;  %v836_v46 = vadd.f32 %v834_v43, %v1393_v34 }
 0x12d   :  { %847 = vst.msk [vmem:[#allocation2] sm:$0xff] %vm846_vm5, %v844_v45  ;;  %v845_v47 = vadd.f32 %v921_v40, %v836_v46 }
 0x12f   :  { %848 = vst.msk [vmem:[#allocation2 + $0x8] sm:$0xff] %vm846_vm5, %v845_v47 }
 0x130   :  { %1144 = shalt.err (!%p1141_p4)
}
 0x131   :  { %s1145_s19 = scalar_lea.hbm %s1420_s8, 256 }
 0x132   :  { %p1146_p5 = scmp.ne.s32.totalorder %s1420_s8, %s1145_s19  ;;  %p1149_p6 = scmp.lt.u32.totalorder %s1145_s19, %s1420_s8 }
 0x134   :  { %p1151_p7 = pnand %p1149_p6, %p1146_p5 }
 0x136   :  { %1154 = shalt.err (!%p1151_p7)
}
 0x137   :  { %s1160_s24 = smov 128   ;;  %s1161_s25 = smov 8  }
 0x138   :  { %860 = dma.vmem_to_hbm [thread:$0]  %s855_s17, 256, %s1420_s8, [#allocation3], %s1160_s24, %s1160_s24, %s1161_s25  }
 0x139   :  { %1155 = dma.done.wait [#allocation3], 256  }
 0x13a   :  { %1156 = vsyncadd [#allocation3], 4294967040 }
 0x13b   :  { %864 = vsyncpa [#allocation3], 1 }

</bundles_post_ra>
